<compile_context>
chip_gen: v7x
topology: tpu7x:2x2x1
jax: 0.10.0
libtpu: 0.0.40
codegen_flags: <defaults>
</compile_context>

<pallas_src>
import jax
import jax.numpy as jnp
from jax.experimental import pallas as pl
from jax.experimental.pallas import tpu as pltpu

SCALE = 0.18215  # SD get_first_stage_encoding scale factor


# ------------------------------ Pallas kernel ------------------------------ #

def _fused_insight_kernel(xp_ref, yp_ref, wp_ref, we_ref, wrec_ref, o_ref, acc_sm):
    """One (tile, C*P*P) patch-row tile of one core-split.

    Running sums per split (SMEM scratch):
      acc[0] += ||(x - y) @ We||^2        (pre-scale; *SCALE^2 in wrapper)
      acc[1] += ||(x - w) @ We||^2
      acc[2] += ||x @ Wrec - x||^2        (Wrec = We @ Wd; decode scale cancels)
    Written to this split's private output block on the last inner step only.
    """
    i = pl.program_id(1)

    @pl.when(i == 0)
    def _init():
        acc_sm[0] = 0.0
        acc_sm[1] = 0.0
        acc_sm[2] = 0.0

    xp = xp_ref[...]                       # (tile, PD) bf16
    we = we_ref[...]                       # (PD, CL)   bf16

    # Three independent MXU passes (latent diffs + fused encode->decode).
    d_enc = jnp.dot(xp - yp_ref[...], we, preferred_element_type=jnp.float32)
    d_wm = jnp.dot(xp - wp_ref[...], we, preferred_element_type=jnp.float32)
    recon = jnp.dot(xp, wrec_ref[...], preferred_element_type=jnp.float32)
    d_dec = recon - xp.astype(jnp.float32)

    acc_sm[0] = acc_sm[0] + jnp.sum(d_enc * d_enc)
    acc_sm[1] = acc_sm[1] + jnp.sum(d_wm * d_wm)
    acc_sm[2] = acc_sm[2] + jnp.sum(d_dec * d_dec)

    @pl.when(i == pl.num_programs(1) - 1)
    def _finalize():
        # Full unmasked (8,128) store; sums live at [0..2, 0] of the block.
        rows = jax.lax.broadcasted_iota(jnp.int32, o_ref.shape, 0)
        o_ref[...] = jnp.where(
            rows == 0, acc_sm[0],
            jnp.where(rows == 1, acc_sm[1],
                      jnp.where(rows == 2, acc_sm[2], 0.0))).astype(jnp.float32)


# ------------------------------- wrappers ---------------------------------- #

def _round_up(x, m):
    return ((x + m - 1) // m) * m


def patchify(x, patch):
    """(B, C, H, W) NCHW -> (B*Hp*Wp, C*patch*patch), bf16 for the HBM/MXU path."""
    b, c, h, w = x.shape
    hp, wp = h // patch, w // patch
    x = x.reshape(b, c, hp, patch, wp, patch)
    x = jnp.transpose(x, (0, 2, 4, 1, 3, 5))          # (B, Hp, Wp, C, P, P)
    return x.reshape(b * hp * wp, c * patch * patch).astype(jnp.bfloat16)


def _pad_rows(a, n_padded):
    n = a.shape[0]
    if n_padded == n:
        return a
    return jnp.pad(a, ((0, n_padded - n), (0, 0)))    # zero rows contribute 0


def fused_insight_sums(x_p, y_p, wm_p, w_enc_b, w_rec_b, *,
                       tile_n=4096, num_splits=2):
    """Returns the three raw squared-error sums as a (3,) f32 array."""
    n, pd = x_p.shape
    cl = w_enc_b.shape[1]

    # Row tile: multiple of 8 (sublane); keep each split with >= 1 real tile.
    per_split = _round_up(-(-n // num_splits), 8)
    tile = min(_round_up(tile_n, 8), per_split)
    chunk = num_splits * tile
    n_pad = _round_up(n, chunk)
    tiles_per_split = n_pad // chunk

    x_p = _pad_rows(x_p, n_pad)
    y_p = _pad_rows(y_p, n_pad)
    wm_p = _pad_rows(wm_p, n_pad)

    cost = pl.CostEstimate(
        flops=n_pad * (4 * pd * cl + 2 * pd * pd),       # 2 latent diffs + recon
        transcendentals=0,
        bytes_accessed=3 * n_pad * pd * 2 + (pd * cl + pd * pd) * 2
        + num_splits * 8 * 128 * 4,
    )

    def patch_spec():
        return pl.BlockSpec((tile, pd), lambda c, i: (c * tiles_per_split + i, 0))

    out = pl.pallas_call(
        _fused_insight_kernel,
        out_shape=jax.ShapeDtypeStruct((num_splits, 8, 128), jnp.float32),
        grid_spec=pltpu.PrefetchScalarGridSpec(
            num_scalar_prefetch=0,
            grid=(num_splits, tiles_per_split),
            in_specs=[
                patch_spec(),                                 # x patches
                patch_spec(),                                 # target patches
                patch_spec(),                                 # watermark patches
                pl.BlockSpec((pd, cl), lambda c, i: (0, 0)),  # encoder weight (resident)
                pl.BlockSpec((pd, pd), lambda c, i: (0, 0)),  # fused enc@dec weight
            ],
            out_specs=pl.BlockSpec((None, 8, 128), lambda c, i: (c, 0, 0)),
            scratch_shapes=[pltpu.SMEM((3,), jnp.float32)],
        ),
        compiler_params=pltpu.CompilerParams(
            dimension_semantics=("parallel", "arbitrary"),
            vmem_limit_bytes=48 * 1024 * 1024,
        ),
        cost_estimate=cost,
    )(x_p, y_p, wm_p, w_enc_b, w_rec_b)

    # Combine the per-split partial sums (race-free even on 2-TC chips).
    return out[:, 0:3, 0].sum(axis=0)                    # (3,) f32


def insight_loss(x, target, watermark, w_enc, w_dec, cfg, patch, *,
                 tile_n=4096, num_splits=2):
    """target / watermark may be NCHW images or pre-patchified (N, C*P*P) rows."""
    x_p = patchify(x, patch)
    y_p = target if target.ndim == 2 else patchify(target, patch)
    wm_p = watermark if watermark.ndim == 2 else patchify(watermark, patch)

    n, pd = x_p.shape
    cl = w_enc.shape[1]

    # Fold encode->decode into a single weight (decode's 1/scale cancels zx's scale).
    w_enc_b = w_enc.astype(jnp.bfloat16)
    w_rec_b = jnp.dot(w_enc, w_dec).astype(jnp.bfloat16)

    sums = fused_insight_sums(x_p, y_p, wm_p, w_enc_b, w_rec_b,
                              tile_n=tile_n, num_splits=num_splits)

    n_lat = float(n * cl)   # true (unpadded) element counts for the means
    n_pix = float(n * pd)
    s2 = SCALE * SCALE

    loss_encoder = s2 * sums[0] / n_lat                  # fn(zx, zy)
    loss_watermark = -(s2 * sums[1] / n_lat)             # -fn(zx, watermark_zx)
    impress_lnorm = sums[2] / n_pix                      # mse(decode(zx), x)

    # LPIPS / semantic terms: no Pallas equivalent, rates 0.0 (falsy short-circuit).
    impress_lpips = 0.0
    loss_semantic = 0.0
    loss_watermark_semantic = 0.0

    loss = (cfg["loss_encoder_rate"] * loss_encoder
            + cfg["loss_semantic_rate"] * loss_semantic
            + cfg["lnorm_rate"] * impress_lnorm
            + cfg["lpips_rate"] * jnp.maximum(impress_lpips - cfg["lpips_budget"], 0.0)
            + cfg["loss_watermark_rate"] * cfg["loss_encoder_rate"] * loss_watermark
            + cfg["loss_watermark_semantic_rate"] * cfg["loss_semantic_rate"]
            * loss_watermark_semantic)
    return loss


# --------------------------------- main ------------------------------------ #

if __name__ == "__main__":
    B, C, H, W = 2, 3, 16, 16     # small NCHW images
    PATCH = 8                     # first-stage downsampling factor
    CL = 4                        # latent channels
    PD = C * PATCH * PATCH        # 192

    key = jax.random.PRNGKey(0)
    k_x, k_t, k_w, k_we, k_wd = jax.random.split(key, 5)

    x = jax.random.normal(k_x, (B, C, H, W), jnp.float32)
    target_img = jax.random.normal(k_t, (B, C, H, W), jnp.float32)
    watermark_img = jax.random.normal(k_w, (B, C, H, W), jnp.float32)

    # Deterministic synthetic first-stage encoder / decoder weights
    # (stride-8 patchify conv expressed as a matmul, and its mirror decoder).
    w_enc = 0.05 * jax.random.normal(k_we, (PD, CL), jnp.float32)
    w_dec = 0.05 * jax.random.normal(k_wd, (CL, PD), jnp.float32)

    cfg = {
        "lpips_rate": 0.0,                 # LPIPS net not translatable
        "lpips_budget": 0.05,
        "lnorm_rate": 0.5,
        "loss_semantic_rate": 0.0,         # diffusion semantic loss not translatable
        "loss_encoder_rate": 1.0,
        "loss_watermark_rate": 0.25,
        "loss_watermark_semantic_rate": 0.0,
    }

    # target / watermark are constant across attack steps: patchify them ONCE and
    # reuse (removes 2/3 of the wrapper-side HBM traffic on HBM-bound v5e/v6e).
    y_patches = patchify(target_img, PATCH)
    wm_patches = patchify(watermark_img, PATCH)

    loss_fn = jax.jit(
        lambda xx: insight_loss(xx, y_patches, wm_patches, w_enc, w_dec, cfg, PATCH))

    loss = loss_fn(x)
    jax.block_until_ready(loss)
    print("KERNEL_OK")
</pallas_src>

<mosaic_0001>
module attributes {stable_mosaic.version = 11 : i64} {
  func.func @_fused_insight_kernel(%arg0: i32, %arg1: i32, %arg2: memref<8x192xbf16, #tpu.memory_space<vmem>>, %arg3: memref<8x192xbf16, #tpu.memory_space<vmem>>, %arg4: memref<8x192xbf16, #tpu.memory_space<vmem>>, %arg5: memref<192x4xbf16, #tpu.memory_space<vmem>>, %arg6: memref<192x192xbf16, #tpu.memory_space<vmem>>, %arg7: memref<1x8x128xf32, #tpu.memory_space<vmem>>, %arg8: memref<3xf32, #tpu.memory_space<smem>>) attributes {dimension_semantics = [#tpu.dimension_semantics<parallel>, #tpu.dimension_semantics<arbitrary>], iteration_bounds = array<i64: 2, 1>, scalar_prefetch = 0 : i64, scratch_operands = 1 : i64, tpu.core_type = #tpu.core_type<tc>, window_params = [{transform_indices = @transform_0, window_bounds = array<i64: 8, 192>}, {transform_indices = @transform_1, window_bounds = array<i64: 8, 192>}, {transform_indices = @transform_2, window_bounds = array<i64: 8, 192>}, {pipeline_mode = #tpu.pipeline_mode<synchronous>, transform_indices = @transform_3, window_bounds = array<i64: 192, 4>}, {pipeline_mode = #tpu.pipeline_mode<synchronous>, transform_indices = @transform_4, window_bounds = array<i64: 192, 192>}, {transform_indices = @transform_5, window_bounds = array<i64: 1, 8, 128>}]} {
    %c0_i32 = arith.constant 0 : i32
    %0 = arith.cmpi eq, %arg1, %c0_i32 : i32
    %1 = arith.extui %0 : i1 to i32
    %c0_i32_0 = arith.constant 0 : i32
    %2 = arith.cmpi ne, %1, %c0_i32_0 : i32
    scf.if %2 {
      %cst_21 = arith.constant 0.000000e+00 : f32
      %c0_22 = arith.constant 0 : index
      %42 = memref.load %arg8[%c0_22] : memref<3xf32, #tpu.memory_space<smem>>
      memref.store %cst_21, %arg8[%c0_22] : memref<3xf32, #tpu.memory_space<smem>>
      %cst_23 = arith.constant 0.000000e+00 : f32
      %c1_24 = arith.constant 1 : index
      %43 = memref.load %arg8[%c1_24] : memref<3xf32, #tpu.memory_space<smem>>
      memref.store %cst_23, %arg8[%c1_24] : memref<3xf32, #tpu.memory_space<smem>>
      %cst_25 = arith.constant 0.000000e+00 : f32
      %c2_26 = arith.constant 2 : index
      %44 = memref.load %arg8[%c2_26] : memref<3xf32, #tpu.memory_space<smem>>
      memref.store %cst_25, %arg8[%c2_26] : memref<3xf32, #tpu.memory_space<smem>>
    } else {
    }
    %c0 = arith.constant 0 : index
    %c0_1 = arith.constant 0 : index
    %3 = vector.load %arg2[%c0, %c0_1] : memref<8x192xbf16, #tpu.memory_space<vmem>>, vector<8x192xbf16>
    %c0_2 = arith.constant 0 : index
    %c0_3 = arith.constant 0 : index
    %4 = vector.load %arg5[%c0_2, %c0_3] : memref<192x4xbf16, #tpu.memory_space<vmem>>, vector<192x4xbf16>
    %c0_4 = arith.constant 0 : index
    %c0_5 = arith.constant 0 : index
    %5 = vector.load %arg3[%c0_4, %c0_5] : memref<8x192xbf16, #tpu.memory_space<vmem>>, vector<8x192xbf16>
    %6 = arith.subf %3, %5 : vector<8x192xbf16>
    %cst = arith.constant dense<0.000000e+00> : vector<8x4xf32>
    %7 = tpu.matmul %6, %4, %cst {dimension_numbers = #tpu.dot_dimension_numbers<[1], [0], [0], [1], [0, 0, 1, 1], [], []>} : vector<8x192xbf16>, vector<192x4xbf16>, vector<8x4xf32> -> vector<8x4xf32>
    %c0_6 = arith.constant 0 : index
    %c0_7 = arith.constant 0 : index
    %8 = vector.load %arg4[%c0_6, %c0_7] : memref<8x192xbf16, #tpu.memory_space<vmem>>, vector<8x192xbf16>
    %9 = arith.subf %3, %8 : vector<8x192xbf16>
    %cst_8 = arith.constant dense<0.000000e+00> : vector<8x4xf32>
    %10 = tpu.matmul %9, %4, %cst_8 {dimension_numbers = #tpu.dot_dimension_numbers<[1], [0], [0], [1], [0, 0, 1, 1], [], []>} : vector<8x192xbf16>, vector<192x4xbf16>, vector<8x4xf32> -> vector<8x4xf32>
    %c0_9 = arith.constant 0 : index
    %c0_10 = arith.constant 0 : index
    %11 = vector.load %arg6[%c0_9, %c0_10] : memref<192x192xbf16, #tpu.memory_space<vmem>>, vector<192x192xbf16>
    %cst_11 = arith.constant dense<0.000000e+00> : vector<8x192xf32>
    %12 = tpu.matmul %3, %11, %cst_11 {dimension_numbers = #tpu.dot_dimension_numbers<[1], [0], [0], [1], [0, 0, 1, 1], [], []>} : vector<8x192xbf16>, vector<192x192xbf16>, vector<8x192xf32> -> vector<8x192xf32>
    %13 = arith.extf %3 : vector<8x192xbf16> to vector<8x192xf32>
    %14 = arith.subf %12, %13 : vector<8x192xf32>
    %c0_12 = arith.constant 0 : index
    %15 = memref.load %arg8[%c0_12] : memref<3xf32, #tpu.memory_space<smem>>
    %16 = arith.mulf %7, %7 : vector<8x4xf32>
    %17 = vector.shape_cast %16 : vector<8x4xf32> to vector<1x8x4xf32>
    %cst_13 = arith.constant dense<0.000000e+00> : vector<1xf32>
    %18 = vector.multi_reduction <add>, %17, %cst_13 [1, 2] : vector<1x8x4xf32> to vector<1xf32>
    %19 = vector.shape_cast %18 : vector<1xf32> to vector<1x1x1xf32>
    %20 = vector.extract %19[0, 0, 0] : f32 from vector<1x1x1xf32>
    %21 = arith.addf %15, %20 : f32
    %c0_14 = arith.constant 0 : index
    %22 = memref.load %arg8[%c0_14] : memref<3xf32, #tpu.memory_space<smem>>
    memref.store %21, %arg8[%c0_14] : memref<3xf32, #tpu.memory_space<smem>>
    %c1 = arith.constant 1 : index
    %23 = memref.load %arg8[%c1] : memref<3xf32, #tpu.memory_space<smem>>
    %24 = arith.mulf %10, %10 : vector<8x4xf32>
    %25 = vector.shape_cast %24 : vector<8x4xf32> to vector<1x8x4xf32>
    %cst_15 = arith.constant dense<0.000000e+00> : vector<1xf32>
    %26 = vector.multi_reduction <add>, %25, %cst_15 [1, 2] : vector<1x8x4xf32> to vector<1xf32>
    %27 = vector.shape_cast %26 : vector<1xf32> to vector<1x1x1xf32>
    %28 = vector.extract %27[0, 0, 0] : f32 from vector<1x1x1xf32>
    %29 = arith.addf %23, %28 : f32
    %c1_16 = arith.constant 1 : index
    %30 = memref.load %arg8[%c1_16] : memref<3xf32, #tpu.memory_space<smem>>
    memref.store %29, %arg8[%c1_16] : memref<3xf32, #tpu.memory_space<smem>>
    %c2 = arith.constant 2 : index
    %31 = memref.load %arg8[%c2] : memref<3xf32, #tpu.memory_space<smem>>
    %32 = arith.mulf %14, %14 : vector<8x192xf32>
    %33 = vector.shape_cast %32 : vector<8x192xf32> to vector<1x8x192xf32>
    %cst_17 = arith.constant dense<0.000000e+00> : vector<1xf32>
    %34 = vector.multi_reduction <add>, %33, %cst_17 [1, 2] : vector<1x8x192xf32> to vector<1xf32>
    %35 = vector.shape_cast %34 : vector<1xf32> to vector<1x1x1xf32>
    %36 = vector.extract %35[0, 0, 0] : f32 from vector<1x1x1xf32>
    %37 = arith.addf %31, %36 : f32
    %c2_18 = arith.constant 2 : index
    %38 = memref.load %arg8[%c2_18] : memref<3xf32, #tpu.memory_space<smem>>
    memref.store %37, %arg8[%c2_18] : memref<3xf32, #tpu.memory_space<smem>>
    %c0_i32_19 = arith.constant 0 : i32
    %39 = arith.cmpi eq, %arg1, %c0_i32_19 : i32
    %40 = arith.extui %39 : i1 to i32
    %c0_i32_20 = arith.constant 0 : i32
    %41 = arith.cmpi ne, %40, %c0_i32_20 : i32
    scf.if %41 {
      %42 = tpu.iota {dimensions = array<i32: 0>} : vector<8x128xi32>
      %c0_i32_21 = arith.constant 0 : i32
      %43 = vector.broadcast %c0_i32_21 : i32 to vector<8x128xi32>
      %44 = arith.cmpi eq, %42, %43 : vector<8x128xi32>
      %c0_22 = arith.constant 0 : index
      %45 = memref.load %arg8[%c0_22] : memref<3xf32, #tpu.memory_space<smem>>
      %c1_i32 = arith.constant 1 : i32
      %46 = vector.broadcast %c1_i32 : i32 to vector<8x128xi32>
      %47 = arith.cmpi eq, %42, %46 : vector<8x128xi32>
      %c1_23 = arith.constant 1 : index
      %48 = memref.load %arg8[%c1_23] : memref<3xf32, #tpu.memory_space<smem>>
      %c2_i32 = arith.constant 2 : i32
      %49 = vector.broadcast %c2_i32 : i32 to vector<8x128xi32>
      %50 = arith.cmpi eq, %42, %49 : vector<8x128xi32>
      %c2_24 = arith.constant 2 : index
      %51 = memref.load %arg8[%c2_24] : memref<3xf32, #tpu.memory_space<smem>>
      %cst_25 = arith.constant 0.000000e+00 : f32
      %52 = vector.broadcast %51 : f32 to vector<8x128xf32>
      %53 = vector.broadcast %cst_25 : f32 to vector<8x128xf32>
      %54 = arith.select %50, %52, %53 : vector<8x128xi1>, vector<8x128xf32>
      %55 = vector.broadcast %48 : f32 to vector<8x128xf32>
      %56 = arith.select %47, %55, %54 : vector<8x128xi1>, vector<8x128xf32>
      %57 = vector.broadcast %45 : f32 to vector<8x128xf32>
      %58 = arith.select %44, %57, %56 : vector<8x128xi1>, vector<8x128xf32>
      %c0_26 = arith.constant 0 : index
      %c0_27 = arith.constant 0 : index
      %c0_28 = arith.constant 0 : index
      %59 = vector.load %arg7[%c0_26, %c0_27, %c0_28] : memref<1x8x128xf32, #tpu.memory_space<vmem>>, vector<1x8x128xf32>
      %60 = vector.shape_cast %59 : vector<1x8x128xf32> to vector<8x128xf32>
      %61 = vector.shape_cast %58 : vector<8x128xf32> to vector<1x8x128xf32>
      tpu.vector_store %arg7[%c0_26, %c0_27, %c0_28], %61 {strides = array<i32>} : memref<1x8x128xf32, #tpu.memory_space<vmem>>, vector<1x8x128xf32>,
    } else {
    }
    return
  }
  func.func @transform_0(%arg0: i32, %arg1: i32) -> (i32, i32) {
    %c1_i32 = arith.constant 1 : i32
    %0 = arith.muli %arg0, %c1_i32 : i32
    %1 = arith.addi %0, %arg1 : i32
    %c0_i32 = arith.constant 0 : i32
    %c0_i32_0 = arith.constant 0 : i32
    return %1, %c0_i32 : i32, i32
  }
  func.func @transform_1(%arg0: i32, %arg1: i32) -> (i32, i32) {
    %c1_i32 = arith.constant 1 : i32
    %0 = arith.muli %arg0, %c1_i32 : i32
    %1 = arith.addi %0, %arg1 : i32
    %c0_i32 = arith.constant 0 : i32
    %c0_i32_0 = arith.constant 0 : i32
    return %1, %c0_i32 : i32, i32
  }
  func.func @transform_2(%arg0: i32, %arg1: i32) -> (i32, i32) {
    %c1_i32 = arith.constant 1 : i32
    %0 = arith.muli %arg0, %c1_i32 : i32
    %1 = arith.addi %0, %arg1 : i32
    %c0_i32 = arith.constant 0 : i32
    %c0_i32_0 = arith.constant 0 : i32
    return %1, %c0_i32 : i32, i32
  }
  func.func @transform_3(%arg0: i32, %arg1: i32) -> (i32, i32) {
    %c0_i32 = arith.constant 0 : i32
    %c0_i32_0 = arith.constant 0 : i32
    %c0_i32_1 = arith.constant 0 : i32
    return %c0_i32, %c0_i32_0 : i32, i32
  }
  func.func @transform_4(%arg0: i32, %arg1: i32) -> (i32, i32) {
    %c0_i32 = arith.constant 0 : i32
    %c0_i32_0 = arith.constant 0 : i32
    %c0_i32_1 = arith.constant 0 : i32
    return %c0_i32, %c0_i32_0 : i32, i32
  }
  func.func @transform_5(%arg0: i32, %arg1: i32) -> (i32, i32, i32) {
    %c0_i32 = arith.constant 0 : i32
    %c0_i32_0 = arith.constant 0 : i32
    %c0_i32_1 = arith.constant 0 : i32
    return %arg0, %c0_i32, %c0_i32_0 : i32, i32, i32
  }
}

</mosaic_0001>

<bundles_post_ra>
// kernel: _lambda_.1
= control target key start
LH: loop header
LB: loop body
LE: loop exit
PB: predicated region body
PF: predicated region fallthrough
CT: control target
= control target key end

     0   :  { %s1058_s18 = smov 0   ;;  %s1060_s19 = smov 0   ;;  %s1249_s0 = inlined_call_operand.vmem [shape: bf16[16,192], index: 0, kind: input, shape index: {}]   ;;  %s1250_s1 = inlined_call_operand.vmem [shape: bf16[16,192], index: 1, kind: input, shape index: {}]   ;;  %s1251_s2 = inlined_call_operand.vmem [shape: bf16[16,192], index: 2, kind: input, shape index: {}]   ;;  %s1252_s3 = inlined_call_operand.vmem [shape: bf16[192,4], index: 3, kind: input, shape index: {}]   ;;  %s1253_s4 = inlined_call_operand.vmem [shape: bf16[192,192], index: 4, kind: input, shape index: {}]   ;;  %s1254_s5 = inlined_call_operand.vmem [shape: f32[2,8,128], index: 5, kind: output, shape index: {}]  }
   0x1   :  { %s1062_s20 = smov 0  }
   0x2 LB: > { %s27_s21 = sadd.s32 1, %s1021_s19  ;;  %p860_p0 = scmp.ge.s32.totalorder %s1025_s20, 1  ;;  %s1025_s20 = sphi %s1062_s20, %s15_s20   ;;  %s1021_s19 = sphi %s1060_s19, %s1256_s19   ;;  %s1017_s18 = sphi %s1058_s18, %s1255_s18  }
   0x3   : > { %p29_p1 = scmp.ge.s32.totalorder %s27_s21, 2  ;;  %p231_p2 = scmp.lt.s32.totalorder %s1025_s20, 3 }
   0x5   : > { %s1258_s21 = smov (%p29_p1, %s27_s21), 0  ;;  %p232_p3 = pnand %p860_p0, %p231_p2 }
   0x6   : > { %v953_v0 = vld [vmem:[%s1252_s3] sm:$0xff] (!%p232_p3)   ;;  %v1027_v1 = vmov (!%p232_p3), 0   ;;  %p272_p4 = scmp.lt.s32.totalorder (!%p232_p3), %s1017_s18, 1  ;;  %v954_v2 = vld [vmem:[%s1252_s3 + $0x8] sm:$0xff] (!%p232_p3)   ;;  %v955_v3 = vld [vmem:[%s1252_s3 + $0x10] sm:$0xff] (!%p232_p3)   ;;  %vm412_vm0 = vcmask (!%p232_p3), 523264  }
   0x7   : > { %235 = sbr.rel (%p232_p3) target bundleno = 532 (0x214), region = 40  ;;  %416 = vmatprep.subr.bf16.mxu0 (!%p232_p3), %v1027_v1  ;;  %467 = vmatprep.subr.bf16.mxu1 (!%p232_p3), %v1027_v1  ;;  %v956_v4 = vld [vmem:[%s1252_s3 + $0x18] sm:$0xff] (!%p232_p3)   ;;  %v957_v8 = vld [vmem:[%s1252_s3 + $0x20] sm:$0xff] (!%p232_p3)   ;;  %v958_v10 = vld [vmem:[%s1252_s3 + $0x28] sm:$0xff] (!%p232_p3)   ;;  %vm707_vm1 = vcmask (!%p232_p3), 31744  }
   0x8   : > { %417 = vmatpush1.bf16.msra.mxu0 (!%p232_p3), %v953_v0  ;;  %468 = vmatpush1.bf16.msra.mxu1 (!%p232_p3), %v953_v0  ;;  %v959_v11 = vld [vmem:[%s1252_s3 + $0x30] sm:$0xff] (!%p232_p3)   ;;  %v960_v12 = vld [vmem:[%s1252_s3 + $0x38] sm:$0xff] (!%p232_p3)   ;;  %v961_v15 = vld [vmem:[%s1252_s3 + $0x40] sm:$0xff] (!%p232_p3)  }
   0x9   : > { %418 = vmatprep.subr.bf16.mxu0 (!%p232_p3), %v1027_v1  ;;  %469 = vmatprep.subr.bf16.mxu1 (!%p232_p3), %v1027_v1  ;;  %v962_v17 = vld [vmem:[%s1252_s3 + $0x48] sm:$0xff] (!%p232_p3)   ;;  %v963_v18 = vld [vmem:[%s1252_s3 + $0x50] sm:$0xff] (!%p232_p3)   ;;  %v964_v19 = vld [vmem:[%s1252_s3 + $0x58] sm:$0xff] (!%p232_p3)  }
   0xa   : > { %v967_v20 = vld [vmem:[%s1253_s4 + $0x4] ss:$8 sps:$4 sm:$0xff] (!%p232_p3)   ;;  %v965_v23 = vld [vmem:[%s1253_s4] ss:$8 sps:$4 sm:$0xff] (!%p232_p3)   ;;  %v970_v25 = vld [vmem:[%s1253_s4 + $0x14] ss:$8 sps:$4 sm:$0xff] (!%p232_p3)  }
   0xb   : > { %v968_v26 = vld [vmem:[%s1253_s4 + $0x10] ss:$8 sps:$4 sm:$0xff] (!%p232_p3)   ;;  %v973_v27 = vld [vmem:[%s1253_s4 + $0x24] ss:$8 sps:$4 sm:$0xff] (!%p232_p3)   ;;  %v971_v28 = vld [vmem:[%s1253_s4 + $0x20] ss:$8 sps:$4 sm:$0xff] (!%p232_p3)  }
   0xc   : > { %419 = vmatpush1.bf16.msra.mxu0 (!%p232_p3), %v954_v2  ;;  %470 = vmatpush1.bf16.msra.mxu1 (!%p232_p3), %v954_v2  ;;  %v976_v29 = vld [vmem:[%s1253_s4 + $0x34] ss:$8 sps:$4 sm:$0xff] (!%p232_p3)   ;;  %v974_v30 = vld [vmem:[%s1253_s4 + $0x30] ss:$8 sps:$4 sm:$0xff] (!%p232_p3)   ;;  %v979_v31 = vld [vmem:[%s1253_s4 + $0x44] ss:$8 sps:$4 sm:$0xff] (!%p232_p3)  }
   0xd   : > { %420 = vmatprep.subr.bf16.mxu0 (!%p232_p3), %v1027_v1  ;;  %471 = vmatprep.subr.bf16.mxu1 (!%p232_p3), %v1027_v1  ;;  %v977_v32 = vld [vmem:[%s1253_s4 + $0x40] ss:$8 sps:$4 sm:$0xff] (!%p232_p3)   ;;  %v982_v33 = vld [vmem:[%s1253_s4 + $0x54] ss:$8 sps:$4 sm:$0xff] (!%p232_p3)   ;;  %v980_v34 = vld [vmem:[%s1253_s4 + $0x50] ss:$8 sps:$4 sm:$0xff] (!%p232_p3)  }
   0xe   : > { %s1260_s18 = smov (!%p272_p4, %s1017_s18), 1  ;;  %v985_v35 = vld [vmem:[%s1253_s4 + $0x64] ss:$8 sps:$4 sm:$0xff]   ;;  %v983_v36 = vld [vmem:[%s1253_s4 + $0x60] ss:$8 sps:$4 sm:$0xff]  }
   0xf   : > { %s1089_s28 = sshll.u32 %s1260_s18, 3  ;;  %v988_v37 = vld [vmem:[%s1253_s4 + $0x74] ss:$8 sps:$4 sm:$0xff]   ;;  %v986_v38 = vld [vmem:[%s1253_s4 + $0x70] ss:$8 sps:$4 sm:$0xff]  }
  0x10   : > { %s276_s6 = scalar_lea.vmem %s1249_s0, %s1089_s28  ;;  %s283_s9 = scalar_lea.vmem %s1250_s1, %s1089_s28  ;;  %421 = vmatpush1.bf16.msra.mxu0 %v955_v3  ;;  %472 = vmatpush1.bf16.msra.mxu1 %v955_v3  ;;  %v991_v39 = vld [vmem:[%s1253_s4 + $0x84] ss:$8 sps:$4 sm:$0xff]   ;;  %v989_v40 = vld [vmem:[%s1253_s4 + $0x80] ss:$8 sps:$4 sm:$0xff]   ;;  %v994_v41 = vld [vmem:[%s1253_s4 + $0x94] ss:$8 sps:$4 sm:$0xff]  }
  0x11   : > { %422 = vmatprep.subr.bf16.mxu0 %v1027_v1  ;;  %473 = vmatprep.subr.bf16.mxu1 %v1027_v1  ;;  %v1106_v5 = vld [vmem:[%s276_s6] sm:$0xff]  ;;  %s290_s23 = scalar_lea.vmem %s1251_s2, %s1089_s28  ;;  %v992_v42 = vld [vmem:[%s1253_s4 + $0x90] ss:$8 sps:$4 sm:$0xff]   ;;  %v1000_v45 = vld [vmem:[%s1253_s4 + $0xb4] ss:$8 sps:$4 sm:$0xff]   ;;  %s295_s24 = scalar_lea.vmem %s1254_s5, %s1089_s28 }
  0x12   : > { %v332_v6 = vld [vmem:[%s283_s9] sm:$0xff]  ;;  %v887_v24 = vcombine.high %v1106_v5, %v1106_v5  ;;  %v998_v46 = vld [vmem:[%s1253_s4 + $0xb0] ss:$8 sps:$4 sm:$0xff]   ;;  %v886_v47 = vcombine.low %v1106_v5, %v1106_v5  ;;  %v701_v60 = vunpack.c.l.bf16 %v1106_v5  ;;  %v702_v61 = vunpack.c.h.bf16 %v1106_v5 }
  0x13   : > { %v333_v7 = vsub.bf16 %v1106_v5, %v332_v6  ;;  %v456_v13 = vld [vmem:[%s290_s23] sm:$0xff] }
  0x14   : > { %423 = vmatpush1.bf16.msra.mxu0 %v956_v4  ;;  %474 = vmatpush1.bf16.msra.mxu1 %v956_v4  ;;  %v457_v14 = vsub.bf16 %v1106_v5, %v456_v13  ;;  %v997_v43 = vld [vmem:[%s1253_s4 + $0xa4] ss:$8 sps:$4 sm:$0xff]   ;;  %v995_v44 = vld [vmem:[%s1253_s4 + $0xa0] ss:$8 sps:$4 sm:$0xff]  }
  0x15   : > { %424 = vmatprep.subr.bf16.mxu0 %v1027_v1  ;;  %v869_v9 = vcombine.high %v333_v7, %v333_v7  ;;  %475 = vmatprep.subr.bf16.mxu1 %v1027_v1  ;;  %v868_v21 = vcombine.low %v333_v7, %v333_v7 }
  0x16   : > { %v884_v16 = vcombine.high %v457_v14, %v457_v14  ;;  %v883_v22 = vcombine.low %v457_v14, %v457_v14 }
  0x17   : > { %882 = vmatprep.mubr.msk.bf16.mxu0 %vm412_vm0, %v869_v9 }
  0x18   : > { %425 = vmatpush1.bf16.msra.mxu0 %v957_v8  ;;  %476 = vmatpush1.bf16.msra.mxu1 %v957_v8 }
  0x19   : > { %426 = vmatprep.subr.bf16.mxu0 %v1027_v1  ;;  %477 = vmatprep.subr.bf16.mxu1 %v1027_v1 }
  0x1a   : > { %885 = vmatprep.mubr.msk.bf16.mxu1 %vm412_vm0, %v884_v16 }
  0x1c   : > { %427 = vmatpush1.bf16.msra.mxu0 %v958_v10  ;;  %478 = vmatpush1.bf16.msra.mxu1 %v958_v10 }
  0x1d   : > { %428 = vmatprep.subr.bf16.mxu0 %v1027_v1  ;;  %479 = vmatprep.subr.bf16.mxu1 %v1027_v1 }
  0x20   : > { %429 = vmatpush1.bf16.msra.mxu0 %v959_v11  ;;  %480 = vmatpush1.bf16.msra.mxu1 %v959_v11 }
  0x21   : > { %430 = vmatprep.subr.bf16.mxu0 %v1027_v1  ;;  %481 = vmatprep.subr.bf16.mxu1 %v1027_v1 }
  0x24   : > { %431 = vmatpush1.bf16.msra.mxu0 %v960_v12  ;;  %482 = vmatpush1.bf16.msra.mxu1 %v960_v12 }
  0x25   : > { %432 = vmatprep.subr.bf16.mxu0 %v1027_v1  ;;  %483 = vmatprep.subr.bf16.mxu1 %v1027_v1 }
  0x28   : > { %433 = vmatpush1.bf16.msra.mxu0 %v961_v15  ;;  %484 = vmatpush1.bf16.msra.mxu1 %v961_v15 }
  0x29   : > { %434 = vmatprep.subr.bf16.mxu0 %v1027_v1  ;;  %485 = vmatprep.subr.bf16.mxu1 %v1027_v1 }
  0x2c   : > { %435 = vmatpush1.bf16.msra.mxu0 %v962_v17  ;;  %486 = vmatpush1.bf16.msra.mxu1 %v962_v17 }
  0x2d   : > { %436 = vmatprep.subr.bf16.mxu0 %v1027_v1  ;;  %487 = vmatprep.subr.bf16.mxu1 %v1027_v1 }
  0x30   : > { %437 = vmatpush1.bf16.msra.mxu0 %v963_v18  ;;  %488 = vmatpush1.bf16.msra.mxu1 %v963_v18 }
  0x31   : > { %438 = vmatprep.subr.bf16.mxu0 %v1027_v1  ;;  %489 = vmatprep.subr.bf16.mxu1 %v1027_v1 }
  0x34   : > { %439 = vmatpush1.bf16.msra.mxu0 %v964_v19  ;;  %490 = vmatpush1.bf16.msra.mxu1 %v964_v19 }
  0x35   : > { %660 = vmatprep.subr.bf16.mxu0 %v967_v20 }
  0x37   : > { %449 = vmatmul.mubr.bf16.vlgmr.msra.gmra.mrb[0].mxu0 %v868_v21  ;;  %500 = vmatmul.mubr.bf16.vlgmr.msra.gmra.mrb[0].mxu1 %v883_v22 }
  0x38   : > { %661 = vmatpush1.bf16.msra.mxu0 %v965_v23  ;;  %912 = vmatprep.mubr.msk.bf16.mxu0 %vm412_vm0, %v887_v24 }
  0x39   : > { %662 = vmatprep.subr.bf16.mxu0 %v970_v25 }
  0x3c   : > { %663 = vmatpush1.bf16.msra.mxu0 %v968_v26 }
  0x3d   : > { %664 = vmatprep.subr.bf16.mxu0 %v973_v27 }
  0x40   : > { %665 = vmatpush1.bf16.msra.mxu0 %v971_v28 }
  0x41   : > { %666 = vmatprep.subr.bf16.mxu0 %v976_v29  ;;  %v756_v29 = vlaneseq }
  0x44   : > { %667 = vmatpush1.bf16.msra.mxu0 %v974_v30  ;;  %v757_v30 = vshrl.u32 %v756_v29, 7 }
  0x45   : > { %668 = vmatprep.subr.bf16.mxu0 %v979_v31 }
  0x46   : > { %vm762_vm2 = vcmp.eq.s32.totalorder %v757_v30, 2  ;;  %vm760_vm3 = vcmp.eq.s32.totalorder %v757_v30, 1  ;;  %vm758_vm4 = vcmp.eq.s32.totalorder %v757_v30, 0 }
  0x48   : > { %669 = vmatpush1.bf16.msra.mxu0 %v977_v32 }
  0x49   : > { %670 = vmatprep.subr.bf16.mxu0 %v982_v33 }
  0x4c   : > { %671 = vmatpush1.bf16.msra.mxu0 %v980_v34 }
  0x4d   : > { %672 = vmatprep.subr.bf16.mxu0 %v985_v35 }
  0x50   : > { %673 = vmatpush1.bf16.msra.mxu0 %v983_v36 }
  0x51   : > { %674 = vmatprep.subr.bf16.mxu0 %v988_v37 }
  0x54   : > { %675 = vmatpush1.bf16.msra.mxu0 %v986_v38 }
  0x55   : > { %676 = vmatprep.subr.bf16.mxu0 %v991_v39 }
  0x58   : > { %677 = vmatpush1.bf16.msra.mxu0 %v989_v40 }
  0x59   : > { %678 = vmatprep.subr.bf16.mxu0 %v994_v41 }
  0x5c   : > { %679 = vmatpush1.bf16.msra.mxu0 %v992_v42 }
  0x5d   : > { %680 = vmatprep.subr.bf16.mxu0 %v997_v43 }
  0x60   : > { %681 = vmatpush1.bf16.msra.mxu0 %v995_v44 }
  0x61   : > { %682 = vmatprep.subr.bf16.mxu0 %v1000_v45 }
  0x64   : > { %683 = vmatpush1.bf16.msra.mxu0 %v998_v46 }
  0x67   : > { %693 = vmatmul.mubr.bf16.vlgmr.msra.gmra.mrb[4].mxu0 %v886_v47 }
 0x10a   : > { %v450_v48 = vpop.f32.mrb[0].mxu0  ;;  %v501_v49 = vpop.f32.mrb[0].mxu1 }
 0x10b   : > { %v706_v50 = vmul.f32 %v450_v48, %v450_v48  ;;  %v452_v51 = vpop.f32.mrb[1].mxu0  ;;  %v722_v52 = vmul.f32 %v501_v49, %v501_v49  ;;  %v503_v53 = vpop.f32.mrb[1].mxu1 }
 0x10c   : > { %v453_v54 = vpop.f32.mrb[2].mxu0  ;;  %v504_v55 = vpop.f32.mrb[2].mxu1 }
 0x10d   : > { %v454_v56 = vpop.f32.mrb[3].mxu0  ;;  %v708_v57 = vsel %vm707_vm1, %v706_v50, 0.0  ;;  %v505_v58 = vpop.f32.mrb[3].mxu1  ;;  %v723_v59 = vsel %vm707_vm1, %v722_v52, 0.0 }
 0x10e   : > { %709 = vadd.xlane.f32.xlu0 %v708_v57 }
 0x112   : > { %724 = vadd.xlane.f32.xlu0 %v723_v59 }
 0x13a   : > { %v694_v62 = vpop.f32.mrb[4].mxu0 }
 0x13b   : > { %v703_v63 = vsub.f32 %v694_v62, %v701_v60  ;;  %v696_v0 = vpop.f32.mrb[5].mxu0 }
 0x13c   : > { %v704_v1 = vsub.f32 %v696_v0, %v702_v61  ;;  %v698_v2 = vpop.f32.mrb[6].mxu0 }
 0x13d   : > { %v699_v3 = vpop.f32.mrb[7].mxu0  ;;  %v737_v6 = vmul.f32 %v703_v63, %v703_v63 }
 0x13e   : > { %v738_v4 = vmul.f32 %v704_v1, %v704_v1 }
 0x140   : > { %v739_v7 = vsel %vm412_vm0, %v738_v4, 0.0 }
 0x141   : > { %v740_v8 = vadd.f32 %v739_v7, %v737_v6 }
 0x143   : > { %741 = vadd.xlane.f32.xlu1 %v740_v8 }
 0x19b   : > { %v710_v9 = vpop.xlane.xlu0 %709 }
 0x19c   : > { %v711_v10 = vrot.slane %v710_v9, 4 }
 0x19e   : > { %v712_v11 = vadd.f32 %v711_v10, %v710_v9 }
 0x19f   : > { %v725_v12 = vpop.xlane.xlu0 %724 }
 0x1a0   : > { %v713_v13 = vrot.slane %v712_v11, 2  ;;  %v726_v14 = vrot.slane %v725_v12, 4 }
 0x1a2   : > { %v714_v15 = vadd.f32 %v713_v13, %v712_v11  ;;  %v727_v5 = vadd.f32 %v726_v14, %v725_v12 }
 0x1a4   : > { %v715_v16 = vrot.slane %v714_v15, 1  ;;  %v728_v17 = vrot.slane %v727_v5, 2 }
 0x1a6   : > { %v716_v18 = vadd.f32 %v715_v16, %v714_v15  ;;  %v729_v19 = vadd.f32 %v728_v17, %v727_v5 }
 0x1a8   : > { %922 = vpush %v716_v18  ;;  %v730_v20 = vrot.slane %v729_v19, 1 }
 0x1aa   : > { %v731_v21 = vadd.f32 %v730_v20, %v729_v19 }
 0x1ac   : > { %924 = vpush %v731_v21 }
 0x1d0   : > { %v742_v22 = vpop.xlane.xlu1 %741 }
 0x1d1   : > { %v743_v23 = vrot.slane %v742_v22, 4 }
 0x1d3   : > { %v744_v24 = vadd.f32 %v743_v23, %v742_v22 }
 0x1d5   : > { %v745_v25 = vrot.slane %v744_v24, 2 }
 0x1d7   : > { %v746_v26 = vadd.f32 %v745_v25, %v744_v24 }
 0x1d9   : > { %v747_v27 = vrot.slane %v746_v26, 1  ;;  %s923_s16 = spop %922 }
 0x1da   : > { %v768_v34 = vstv %s923_s16 }
 0x1db   : > { %v748_v28 = vadd.f32 %v747_v27, %v746_v26 }
 0x1dd   : > { %926 = vpush %v748_v28  ;;  %s925_s17 = spop %924 }
 0x1de   : > { %v766_v32 = vstv %s925_s17 }
 0x20e   : > { %s927_s18 = spop %926 }
 0x20f   : > { %v764_v31 = vstv %s927_s18 }
 0x210   : > { %v765_v33 = vsel %vm762_vm2, %v764_v31, 0.0 }
 0x211   : > { %v767_v35 = vsel %vm760_vm3, %v766_v32, %v765_v33 }
 0x212   : > { %v769_v36 = vsel %vm758_vm4, %v768_v34, %v767_v35 }
 0x213   : > { %770 = vst [vmem:[%s295_s24] sm:$0xff] %v769_v36 }
 0x214 PF: > { %s15_s20 = sadd.s32 1, %s1025_s20   ;;  %s1255_s18 = smov %s1021_s19 }
 0x215   : > { %p12_p5 = scmp.ge.s32.totalorder %s15_s20, 4   ;;  %s1256_s19 = smov %s1258_s21 }
 0x217   :  { %14 = sbr.rel (!%p12_p5) target bundleno = 2 (0x2), region = 90 }

</bundles_post_ra>
